<compile_context>
chip_gen: v5e
topology: v5e:2x2
jax: 0.10.0
libtpu: 0.0.40
codegen_flags: <defaults>
</compile_context>

<pallas_src>
import functools

import jax
import jax.numpy as jnp
from jax.experimental import pallas as pl
from jax.experimental.pallas import tpu as pltpu

_NEG_BIG = -1e30  # finite "minus infinity" for masked softmax lanes


def _att_kernel(x_ref, w1_ref, w2_ref, o_ref, acc_ref, *,
                inv_hw, hidden, n_out):
    """One (batch-tile, spatial-tile) grid step.

    x_ref:   (b_tile, c, S_TILE)  f32   current spatial slab of the input
    w1_ref:  (hidden, c)          f32   fc1 weight (PyTorch (out, in) layout)
    w2_ref:  (hidden, out_pad)    f32   fc2 weight, transposed + lane-padded
    o_ref:   (b_tile, out_pad)    f32   softmax output (lane-padded)
    acc_ref: (b_tile, c)          f32   running spatial sum (VMEM scratch)
    """
    si = pl.program_id(1)

    @pl.when(si == 0)
    def _init():
        acc_ref[...] = jnp.zeros_like(acc_ref)

    # Partial global-average-pool: accumulate the spatial sum of this slab.
    # (Padded spatial lanes are zero, so they do not perturb the sum.)
    acc_ref[...] += jnp.sum(x_ref[...], axis=-1)

    @pl.when(si == pl.num_programs(1) - 1)
    def _finalize():
        # Fold the 1/(h*w) scale in exactly once (sum-accumulate, scale-once).
        y = acc_ref[...] * inv_hw                       # (b_tile, c)

        # FC1 (c -> hidden) + ReLU on the VPU: per-output-column lane reduce.
        w1 = w1_ref[...]                                # (hidden, c)
        h_cols = []
        for j in range(hidden):
            hj = jnp.sum(y * w1[j:j + 1, :], axis=-1, keepdims=True)  # (b_tile, 1)
            h_cols.append(jnp.maximum(hj, 0.0))

        # FC2 (hidden -> out_pad) as unrolled VPU broadcast mul-adds.
        w2 = w2_ref[...]                                # (hidden, out_pad)
        z = h_cols[0] * w2[0:1, :]
        for j in range(1, hidden):
            z = z + h_cols[j] * w2[j:j + 1, :]          # (b_tile, out_pad)

        # Mask padded lanes so softmax normalizes over the true 3*c columns.
        col = jax.lax.broadcasted_iota(jnp.int32, z.shape, 1)
        z = jnp.where(col < n_out, z, _NEG_BIG)

        # Numerically-stable softmax over dim=1 (the 3*c axis).
        z = z - jnp.max(z, axis=-1, keepdims=True)
        e = jnp.exp(z)
        denom = jnp.sum(e, axis=-1, keepdims=True)
        o_ref[...] = e * pl.reciprocal(denom, approx=True)


def att_layer_forward(x, w1, w2t, channel, *, s_tile_max=512):
    """x: (b, c, h, w) f32. w1: (hidden, c). w2t: (hidden, 3*c).

    Returns (y1, y2, y3), each (b, c, 1, 1), matching ATTLayer.forward.
    """
    b, c, h, w = x.shape
    assert c == channel
    hw = h * w
    hidden = int(w1.shape[0])
    n_out = 3 * c
    out_pad = ((n_out + 127) // 128) * 128

    # ---- batch tiling (sublane-friendly; full batch if b < 8) ----
    b_tile = b if b < 8 else 8
    b_pad = ((b + b_tile - 1) // b_tile) * b_tile
    nb = b_pad // b_tile

    # ---- spatial tiling (lane axis, multiple of 128) ----
    s_tile = min(int(s_tile_max), ((hw + 127) // 128) * 128)
    s_pad = ((hw + s_tile - 1) // s_tile) * s_tile
    ns = s_pad // s_tile

    # Zero-pad: extra batch rows / spatial cols contribute 0 to the sum and
    # are sliced away afterwards; the mean uses the true h*w.
    x3 = x.reshape(b, c, hw).astype(jnp.float32)
    x3 = jnp.pad(x3, ((0, b_pad - b), (0, 0), (0, s_pad - hw)))
    w1f = w1.astype(jnp.float32)
    w2p = jnp.pad(w2t.astype(jnp.float32), ((0, 0), (0, out_pad - n_out)))

    kernel = functools.partial(
        _att_kernel, inv_hw=1.0 / float(hw), hidden=hidden, n_out=int(n_out))

    # VMEM budget: double-buffered x slab + weights + resident output + scratch.
    blk_bytes = b_tile * c * s_tile * 4
    need = (2 * blk_bytes
            + 2 * (hidden * c + hidden * out_pad) * 4
            + 2 * b_tile * out_pad * 4
            + b_tile * c * 4)
    vmem_limit = int(min(64 * 1024 * 1024, max(8 * 1024 * 1024, 4 * need)))

    cost = pl.CostEstimate(
        flops=int(b * c * hw + 2 * b * c * hidden + 2 * b * hidden * n_out
                  + 4 * b * n_out),
        transcendentals=int(b * n_out + b),
        bytes_accessed=int(x3.size * 4 + w1f.size * 4 + w2p.size * 4
                           + b_pad * out_pad * 4),
    )

    out = pl.pallas_call(
        kernel,
        out_shape=jax.ShapeDtypeStruct((b_pad, out_pad), jnp.float32),
        grid_spec=pltpu.PrefetchScalarGridSpec(
            num_scalar_prefetch=0,
            grid=(nb, ns),
            in_specs=[
                pl.BlockSpec((b_tile, c, s_tile), lambda bi, si: (bi, 0, si)),
                pl.BlockSpec((hidden, c), lambda bi, si: (0, 0)),
                pl.BlockSpec((hidden, out_pad), lambda bi, si: (0, 0)),
            ],
            out_specs=pl.BlockSpec((b_tile, out_pad), lambda bi, si: (bi, 0)),
            scratch_shapes=[pltpu.VMEM((b_tile, c), jnp.float32)],
        ),
        compiler_params=pltpu.CompilerParams(
            dimension_semantics=("parallel", "arbitrary"),
            vmem_limit_bytes=vmem_limit,
        ),
        cost_estimate=cost,
    )(x3, w1f, w2p)

    y = out[:b, :n_out]
    y1 = y[:, 0 * c:1 * c].reshape(b, c, 1, 1)
    y2 = y[:, 1 * c:2 * c].reshape(b, c, 1, 1)
    y3 = y[:, 2 * c:3 * c].reshape(b, c, 1, 1)
    return y1, y2, y3


def reference_forward(x, w1, w2t, channel):
    b, c, h, w = x.shape
    y = jnp.mean(x.reshape(b, c, h * w), axis=-1)
    hdn = jnp.maximum(y @ w1.T, 0.0)
    z = jax.nn.softmax(hdn @ w2t, axis=-1)   # softmax over dim=1 (size 3*c)
    return (z[:, :c].reshape(b, c, 1, 1),
            z[:, c:2 * c].reshape(b, c, 1, 1),
            z[:, 2 * c:].reshape(b, c, 1, 1))


if __name__ == "__main__":
    # Module config (channel=36, reduction=18 -> hidden=2), small spatial.
    channel = 36
    reduction = 18
    hidden = channel // reduction  # = 2

    b, h, w = 2, 8, 8

    key = jax.random.PRNGKey(0)
    kx, k1, k2 = jax.random.split(key, 3)

    x = jax.random.normal(kx, (b, channel, h, w), dtype=jnp.float32)
    # fc1 weight in PyTorch (out, in) layout; fc2 weight pre-transposed (in, out).
    w1 = jax.random.normal(k1, (hidden, channel), dtype=jnp.float32) * 0.1
    w2t = jax.random.normal(k2, (hidden, channel * 3), dtype=jnp.float32) * 0.1

    y1, y2, y3 = att_layer_forward(x, w1, w2t, channel)
    jax.block_until_ready((y1, y2, y3))

    # Sanity check against a pure-JAX reference (tolerance covers the
    # approx-reciprocal used for the softmax denominator).
    r1, r2, r3 = reference_forward(x, w1, w2t, channel)
    assert y1.shape == (b, channel, 1, 1)
    assert y2.shape == (b, channel, 1, 1)
    assert y3.shape == (b, channel, 1, 1)
    assert jnp.allclose(y1, r1, rtol=2e-3, atol=1e-5)
    assert jnp.allclose(y2, r2, rtol=2e-3, atol=1e-5)
    assert jnp.allclose(y3, r3, rtol=2e-3, atol=1e-5)

    print("KERNEL_OK")
</pallas_src>

<mosaic_0001>
module attributes {stable_mosaic.version = 11 : i64} {
  func.func @_att_kernel(%arg0: i32, %arg1: i32, %arg2: memref<2x36x128xf32, #tpu.memory_space<vmem>>, %arg3: memref<2x36xf32, #tpu.memory_space<vmem>>, %arg4: memref<2x128xf32, #tpu.memory_space<vmem>>, %arg5: memref<2x128xf32, #tpu.memory_space<vmem>>, %arg6: memref<2x36xf32, #tpu.memory_space<vmem>>) attributes {dimension_semantics = [#tpu.dimension_semantics<parallel>, #tpu.dimension_semantics<arbitrary>], iteration_bounds = array<i64: 1, 1>, scalar_prefetch = 0 : i64, scratch_operands = 1 : i64, tpu.core_type = #tpu.core_type<tc>, window_params = [{transform_indices = @transform_0, window_bounds = array<i64: 2, 36, 128>}, {pipeline_mode = #tpu.pipeline_mode<synchronous>, transform_indices = @transform_1, window_bounds = array<i64: 2, 36>}, {pipeline_mode = #tpu.pipeline_mode<synchronous>, transform_indices = @transform_2, window_bounds = array<i64: 2, 128>}, {transform_indices = @transform_3, window_bounds = array<i64: 2, 128>}]} {
    %c0_i32 = arith.constant 0 : i32
    %0 = arith.cmpi eq, %arg1, %c0_i32 : i32
    %1 = arith.extui %0 : i1 to i32
    %c0_i32_0 = arith.constant 0 : i32
    %2 = arith.cmpi ne, %1, %c0_i32_0 : i32
    scf.if %2 {
      %cst_9 = arith.constant 0.000000e+00 : f32
      %11 = vector.broadcast %cst_9 : f32 to vector<2x36xf32>
      %c0_10 = arith.constant 0 : index
      %c0_11 = arith.constant 0 : index
      %12 = vector.load %arg6[%c0_10, %c0_11] : memref<2x36xf32, #tpu.memory_space<vmem>>, vector<2x36xf32>
      tpu.vector_store %arg6[%c0_10, %c0_11], %11 {strides = array<i32>} : memref<2x36xf32, #tpu.memory_space<vmem>>, vector<2x36xf32>,
    } else {
    }
    %c0 = arith.constant 0 : index
    %c0_1 = arith.constant 0 : index
    %3 = vector.load %arg6[%c0, %c0_1] : memref<2x36xf32, #tpu.memory_space<vmem>>, vector<2x36xf32>
    %c0_2 = arith.constant 0 : index
    %c0_3 = arith.constant 0 : index
    %c0_4 = arith.constant 0 : index
    %4 = vector.load %arg2[%c0_2, %c0_3, %c0_4] : memref<2x36x128xf32, #tpu.memory_space<vmem>>, vector<2x36x128xf32>
    %cst = arith.constant dense<0.000000e+00> : vector<2x36xf32>
    %5 = vector.multi_reduction <add>, %4, %cst [2] : vector<2x36x128xf32> to vector<2x36xf32>
    %6 = arith.addf %3, %5 : vector<2x36xf32>
    %c0_5 = arith.constant 0 : index
    %c0_6 = arith.constant 0 : index
    %7 = vector.load %arg6[%c0_5, %c0_6] : memref<2x36xf32, #tpu.memory_space<vmem>>, vector<2x36xf32>
    tpu.vector_store %arg6[%c0_5, %c0_6], %6 {strides = array<i32>} : memref<2x36xf32, #tpu.memory_space<vmem>>, vector<2x36xf32>,
    %c0_i32_7 = arith.constant 0 : i32
    %8 = arith.cmpi eq, %arg1, %c0_i32_7 : i32
    %9 = arith.extui %8 : i1 to i32
    %c0_i32_8 = arith.constant 0 : i32
    %10 = arith.cmpi ne, %9, %c0_i32_8 : i32
    scf.if %10 {
      %c0_9 = arith.constant 0 : index
      %c0_10 = arith.constant 0 : index
      %11 = vector.load %arg6[%c0_9, %c0_10] : memref<2x36xf32, #tpu.memory_space<vmem>>, vector<2x36xf32>
      %cst_11 = arith.constant 1.562500e-02 : f32
      %12 = vector.broadcast %cst_11 : f32 to vector<2x36xf32>
      %13 = arith.mulf %11, %12 : vector<2x36xf32>
      %c0_12 = arith.constant 0 : index
      %c0_13 = arith.constant 0 : index
      %14 = vector.load %arg3[%c0_12, %c0_13] : memref<2x36xf32, #tpu.memory_space<vmem>>, vector<2x36xf32>
      %15 = vector.extract_strided_slice %14 {offsets = [0, 0], sizes = [1, 36], strides = [1, 1]} : vector<2x36xf32> to vector<1x36xf32>
      %16 = vector.broadcast %15 : vector<1x36xf32> to vector<2x36xf32>
      %17 = arith.mulf %13, %16 : vector<2x36xf32>
      %cst_14 = arith.constant dense<0.000000e+00> : vector<2xf32>
      %18 = vector.multi_reduction <add>, %17, %cst_14 [1] : vector<2x36xf32> to vector<2xf32>
      %19 = vector.shape_cast %18 : vector<2xf32> to vector<2x1xf32>
      %cst_15 = arith.constant 0.000000e+00 : f32
      %20 = vector.broadcast %cst_15 : f32 to vector<2x1xf32>
      %21 = arith.maximumf %19, %20 : vector<2x1xf32>
      %22 = vector.extract_strided_slice %14 {offsets = [1, 0], sizes = [1, 36], strides = [1, 1]} : vector<2x36xf32> to vector<1x36xf32>
      %23 = vector.broadcast %22 : vector<1x36xf32> to vector<2x36xf32>
      %24 = arith.mulf %13, %23 : vector<2x36xf32>
      %cst_16 = arith.constant dense<0.000000e+00> : vector<2xf32>
      %25 = vector.multi_reduction <add>, %24, %cst_16 [1] : vector<2x36xf32> to vector<2xf32>
      %26 = vector.shape_cast %25 : vector<2xf32> to vector<2x1xf32>
      %cst_17 = arith.constant 0.000000e+00 : f32
      %27 = vector.broadcast %cst_17 : f32 to vector<2x1xf32>
      %28 = arith.maximumf %26, %27 : vector<2x1xf32>
      %c0_18 = arith.constant 0 : index
      %c0_19 = arith.constant 0 : index
      %29 = vector.load %arg4[%c0_18, %c0_19] : memref<2x128xf32, #tpu.memory_space<vmem>>, vector<2x128xf32>
      %30 = vector.extract_strided_slice %29 {offsets = [0, 0], sizes = [1, 128], strides = [1, 1]} : vector<2x128xf32> to vector<1x128xf32>
      %31 = vector.broadcast %21 : vector<2x1xf32> to vector<2x128xf32>
      %32 = vector.broadcast %30 : vector<1x128xf32> to vector<2x128xf32>
      %33 = arith.mulf %31, %32 : vector<2x128xf32>
      %34 = vector.extract_strided_slice %29 {offsets = [1, 0], sizes = [1, 128], strides = [1, 1]} : vector<2x128xf32> to vector<1x128xf32>
      %35 = vector.broadcast %28 : vector<2x1xf32> to vector<2x128xf32>
      %36 = vector.broadcast %34 : vector<1x128xf32> to vector<2x128xf32>
      %37 = arith.mulf %35, %36 : vector<2x128xf32>
      %38 = arith.addf %33, %37 : vector<2x128xf32>
      %39 = tpu.iota {dimensions = array<i32: 1>} : vector<2x128xi32>
      %c108_i32 = arith.constant 108 : i32
      %40 = vector.broadcast %c108_i32 : i32 to vector<2x128xi32>
      %41 = arith.cmpi slt, %39, %40 : vector<2x128xi32>
      %cst_20 = arith.constant -1.000000e+30 : f32
      %42 = vector.broadcast %cst_20 : f32 to vector<2x128xf32>
      %43 = arith.select %41, %38, %42 : vector<2x128xi1>, vector<2x128xf32>
      %cst_21 = arith.constant dense<0xFF800000> : vector<2xf32>
      %44 = vector.multi_reduction <maximumf>, %43, %cst_21 [1] : vector<2x128xf32> to vector<2xf32>
      %45 = vector.shape_cast %44 : vector<2xf32> to vector<2x1xf32>
      %46 = vector.broadcast %45 : vector<2x1xf32> to vector<2x128xf32>
      %47 = arith.subf %43, %46 : vector<2x128xf32>
      %48 = math.exp %47 : vector<2x128xf32>
      %cst_22 = arith.constant dense<0.000000e+00> : vector<2xf32>
      %49 = vector.multi_reduction <add>, %48, %cst_22 [1] : vector<2x128xf32> to vector<2xf32>
      %50 = vector.shape_cast %49 : vector<2xf32> to vector<2x1xf32>
      %51 = tpu.reciprocal %50 {approx = true} : vector<2x1xf32> -> vector<2x1xf32>
      %52 = vector.broadcast %51 : vector<2x1xf32> to vector<2x128xf32>
      %53 = arith.mulf %48, %52 : vector<2x128xf32>
      %c0_23 = arith.constant 0 : index
      %c0_24 = arith.constant 0 : index
      %54 = vector.load %arg5[%c0_23, %c0_24] : memref<2x128xf32, #tpu.memory_space<vmem>>, vector<2x128xf32>
      tpu.vector_store %arg5[%c0_23, %c0_24], %53 {strides = array<i32>} : memref<2x128xf32, #tpu.memory_space<vmem>>, vector<2x128xf32>,
    } else {
    }
    return
  }
  func.func @transform_0(%arg0: i32, %arg1: i32) -> (i32, i32, i32) {
    %c0_i32 = arith.constant 0 : i32
    %c0_i32_0 = arith.constant 0 : i32
    return %arg0, %c0_i32, %arg1 : i32, i32, i32
  }
  func.func @transform_1(%arg0: i32, %arg1: i32) -> (i32, i32) {
    %c0_i32 = arith.constant 0 : i32
    %c0_i32_0 = arith.constant 0 : i32
    %c0_i32_1 = arith.constant 0 : i32
    return %c0_i32, %c0_i32_0 : i32, i32
  }
  func.func @transform_2(%arg0: i32, %arg1: i32) -> (i32, i32) {
    %c0_i32 = arith.constant 0 : i32
    %c0_i32_0 = arith.constant 0 : i32
    %c0_i32_1 = arith.constant 0 : i32
    return %c0_i32, %c0_i32_0 : i32, i32
  }
  func.func @transform_3(%arg0: i32, %arg1: i32) -> (i32, i32) {
    %c0_i32 = arith.constant 0 : i32
    %c0_i32_0 = arith.constant 0 : i32
    return %arg0, %c0_i32 : i32, i32
  }
}

</mosaic_0001>

<bundles_post_ra>
// kernel: tpu_custom_call.1
= control target key start
LH: loop header
LB: loop body
LE: loop exit
PB: predicated region body
PF: predicated region fallthrough
CT: control target
= control target key end

     0   :  { %s251_s0 = inlined_call_operand.vmem [shape: f32[2,36,128], index: 0, kind: input, shape index: {}]   ;;  %s252_s1 = inlined_call_operand.vmem [shape: f32[2,36], index: 1, kind: input, shape index: {}]   ;;  %s253_s2 = inlined_call_operand.vmem [shape: f32[2,128], index: 2, kind: input, shape index: {}]   ;;  %s254_s3 = inlined_call_operand.hbm [shape: f32[2,128], index: 3, kind: output, shape index: {}]  }
   0x1   :  { %v27_v0 = vld [vmem:[%s251_s0 + $0x28] sm:$0xff]  ;;  %v22_v1 = vld [vmem:[%s251_s0] sm:$0xff]  ;;  %v24_v2 = vld [vmem:[%s251_s0 + $0x10] sm:$0xff] }
   0x2   :  { %44 = vadd.xlane.f32.xlu1 %v27_v0  ;;  %32 = vadd.xlane.f32.xlu0 %v22_v1 }
   0x3   :  { %36 = vadd.xlane.f32.xlu2 %v24_v2 }
   0x4   :  { %8 = vsyncpa [#allocation4], 0  ;;  %v28_v3 = vld [vmem:[%s251_s0 + $0x30] sm:$0xff]  ;;  %v23_v4 = vld [vmem:[%s251_s0 + $0x8] sm:$0xff]  ;;  %vm40_vm0 = vcmask 1043456   ;;  %vm19_vm1 = vcmask 287744   ;;  %v65_v16 = vlaneseq }
   0x5   :  { %v29_v5 = vld [vmem:[%s251_s0 + $0x38] sm:$0xff]  ;;  %v26_v6 = vld [vmem:[%s251_s0 + $0x20] sm:$0xf]  ;;  %v31_v10 = vld [vmem:[%s251_s0 + $0x48] sm:$0xf]  ;;  %v186_v12 = vmov 0.0  }
   0x6   :  { %v30_v7 = vld [vmem:[%s251_s0 + $0x40] sm:$0xff]  ;;  %v25_v8 = vld [vmem:[%s251_s0 + $0x18] sm:$0xff]  ;;  %v41_v9 = vsel %vm40_vm0, %v26_v6, 0.0  ;;  %v52_v11 = vsel %vm40_vm0, %v31_v10, 0.0  ;;  %20 = vst.msk [vmem:[#allocation2] sm:$0x3] %vm19_vm1, %v186_v12 }
   0x7   :  { %v66_v19 = vand.u32 127, %v65_v16  ;;  %vm70_vm2 = vcmask 130112   ;;  %vm74_vm3 = vcmask 195712   ;;  %vm78_vm4 = vcmask 261312   ;;  %v104_v50 = vld [vmem:[%s252_s1] sm:$0x3] }
   0x8   :  { %vm82_vm5 = vcmask 326912   ;;  %vm93_vm6 = vcmask 1041409   ;;  %v111_v51 = vperm.slane %v104_v50, 1  ;;  %v105_v52 = vperm.slane %v104_v50, 0  ;;  %v117_v59 = vld [vmem:[%s253_s2] sm:$0x3] }
   0x9   :  { %v68_v21 = vadd.s32 4294967288, %v66_v19  ;;  %v72_v22 = vadd.s32 4294967280, %v66_v19  ;;  %v76_v24 = vadd.s32 4294967272, %v66_v19  ;;  %v80_v31 = vadd.s32 4294967264, %v66_v19  ;;  %s187_s1 = smov [#allocation3]   ;;  %s145_s10 = sshll.u32 %s254_s3, 4  ;;  %s146_s10 = int_to_ptr.hbm [resolvable:$true] %s145_s10 }
   0xa   :  { %46 = vadd.xlane.f32.xlu1 %v28_v3  ;;  %34 = vadd.xlane.f32.xlu0 %v23_v4  ;;  %v120_v60 = vperm.slane %v117_v59, 1  ;;  %v118_v61 = vperm.slane %v117_v59, 0  ;;  %vm123_vm7 = vcmp.lt.s32.totalorder %v66_v19, 108  ;;  %vm125_vm8 = vcmask 1041408   ;;  %s143_s2 = sshll.u32 %s187_s1, 4  ;;  %s144_s2 = int_to_ptr.vmem [resolvable:$true] %s143_s2 }
   0xb   :  { %48 = vadd.xlane.f32.xlu2 %v29_v5 }
   0xd   :  { %v21_v45 = vld [vmem:[#allocation2] sm:$0x3] }
  0x12   :  { %50 = vadd.xlane.f32.xlu1 %v30_v7  ;;  %38 = vadd.xlane.f32.xlu0 %v25_v8 }
  0x13   :  { %42 = vadd.xlane.f32.xlu2 %v41_v9 }
  0x1a   :  { %53 = vadd.xlane.f32.xlu0 %v52_v11 }
  0x75   :  { %v45_v13 = vpop.xlane.xlu1 %44  ;;  %v33_v14 = vpop.xlane.xlu0 %32 }
  0x76   :  { %v37_v15 = vpop.xlane.xlu2 %36  ;;  %v84_v26 = vperm.slane %v45_v13, %v66_v19  ;;  %v67_v27 = vperm.slane %v33_v14, %v66_v19 }
  0x77   :  { %v73_v29 = vperm.slane %v37_v15, %v72_v22 }
  0x7d   :  { %v35_v17 = vpop.xlane.xlu0 %34  ;;  %v47_v18 = vpop.xlane.xlu1 %46 }
  0x7e   :  { %v49_v20 = vpop.xlane.xlu2 %48  ;;  %v69_v23 = vperm.slane %v35_v17, %v68_v21  ;;  %v85_v28 = vperm.slane %v47_v18, %v68_v21 }
  0x7f   :  { %v87_v35 = vperm.slane %v49_v20, %v72_v22 }
  0x80   :  { %v71_v32 = vsel %vm70_vm2, %v69_v23, %v67_v27  ;;  %v86_v36 = vsel %vm70_vm2, %v85_v28, %v84_v26 }
  0x81   :  { %v75_v38 = vsel %vm74_vm3, %v73_v29, %v71_v32  ;;  %v88_v42 = vsel %vm74_vm3, %v87_v35, %v86_v36 }
  0x85   :  { %v39_v25 = vpop.xlane.xlu0 %38  ;;  %v51_v30 = vpop.xlane.xlu1 %50 }
  0x86   :  { %v77_v33 = vperm.slane %v39_v25, %v76_v24  ;;  %v43_v34 = vpop.xlane.xlu2 %42  ;;  %v89_v37 = vperm.slane %v51_v30, %v76_v24 }
  0x87   :  { %v81_v39 = vperm.slane %v43_v34, %v80_v31 }
  0x88   :  { %v79_v40 = vsel %vm78_vm4, %v77_v33, %v75_v38  ;;  %v90_v44 = vsel %vm78_vm4, %v89_v37, %v88_v42 }
  0x89   :  { %v83_v46 = vsel %vm82_vm5, %v81_v39, %v79_v40 }
  0x8d   :  { %v54_v41 = vpop.xlane.xlu0 %53 }
  0x8e   :  { %v91_v43 = vperm.slane %v54_v41, %v80_v31 }
  0x90   :  { %v92_v47 = vsel %vm82_vm5, %v91_v43, %v90_v44 }
  0x91   :  { %v94_v48 = vsel %vm93_vm6, %v92_v47, %v83_v46 }
  0x92   :  { %v96_v49 = vadd.f32 %v94_v48, %v21_v45 }
  0x94   :  { %98 = vst.msk [vmem:[#allocation2] sm:$0x3] %vm19_vm1, %v96_v49 }
  0x9b   :  { %v102_v53 = vld [vmem:[#allocation2] sm:$0x3] }
  0x9c   :  { %v103_v54 = vmul.f32 0.015625, %v102_v53 }
  0x9e   :  { %v112_v55 = vmul.f32 %v111_v51, %v103_v54  ;;  %v106_v56 = vmul.f32 %v105_v52, %v103_v54 }
  0xa0   :  { %v113_v57 = vsel %vm19_vm1, %v112_v55, 0.0  ;;  %v107_v58 = vsel %vm19_vm1, %v106_v56, 0.0 }
  0xa1   :  { %114 = vadd.xlane.f32.xlu2 %v113_v57  ;;  %108 = vadd.xlane.f32.xlu1 %v107_v58 }
 0x114   :  { %v115_v62 = vpop.xlane.xlu2 %114  ;;  %v109_v63 = vpop.xlane.xlu1 %108 }
 0x115   :  { %v116_v0 = vmax.f32 %v115_v62, 0.0  ;;  %v110_v1 = vmax.f32 %v109_v63, 0.0 }
 0x117   :  { %v121_v2 = vmul.f32 %v120_v60, %v116_v0  ;;  %v119_v3 = vmul.f32 %v118_v61, %v110_v1 }
 0x119   :  { %v122_v4 = vadd.f32 %v121_v2, %v119_v3 }
 0x11b   :  { %v124_v5 = vsel %vm123_vm7, %v122_v4, -1e+30 }
 0x11c   :  { %v126_v6 = vsel %vm125_vm8, %v124_v5, -inf }
 0x11d   :  { %127 = vmax.xlane.f32.xlu0 %v126_v6 }
 0x190   :  { %v128_v7 = vpop.xlane.xlu0 %127 }
 0x191   :  { %v129_v8 = vsub.f32 %v124_v5, %v128_v7 }
 0x193   :  { %v130_v9 = vmul.f32 1.442695, %v129_v8 }
 0x195   :  { %156 = vpow2.f32 %v130_v9 }
 0x19b   :  { %v157_v10 = vpop.eup %156 }
 0x19c   :  { %v132_v11 = vsel %vm125_vm8, %v157_v10, 0.0 }
 0x19d   :  { %133 = vadd.xlane.f32.xlu1 %v132_v11 }
 0x210   :  { %v134_v12 = vpop.xlane.xlu1 %133 }
 0x211   :  { %158 = vrcp.f32 %v134_v12 }
 0x217   :  { %v159_v13 = vpop.eup %158 }
 0x218   :  { %v136_v14 = vmul.f32 %v159_v13, %v157_v10 }
 0x21a   :  { %137 = vst [vmem:[#allocation3] sm:$0x3] %v136_v14 }
 0x21b   :  { %148 = dma.vmem_to_hbm [thread:$0]  %s144_s2, 32, %s146_s10, [#allocation4]  }
 0x21c   :  { %184 = dma.done.wait [#allocation4], 32  }
 0x21d   :  { %185 = vsyncadd [#allocation4], 4294967264 }
 0x21e   :  { %153 = vsyncpa [#allocation4], 1 }

</bundles_post_ra>
